<compile_context>
chip_gen: v7x
topology: tpu7x:2x2x1
jax: 0.10.0
libtpu: 0.0.40
codegen_flags: <defaults>
</compile_context>

<pallas_src>
import functools

import jax
import jax.numpy as jnp
from jax.experimental import pallas as pl
from jax.experimental.pallas import tpu as pltpu

EPS = 1e-5


# --------------------------------------------------------------------------
# VMEM budget / tile selection
# --------------------------------------------------------------------------
def _vmem_budget_bytes():
    """Generation-aware scoped-VMEM request (v7x: 64 MiB phys, v5e/v6e: 128)."""
    cap = 64 * 1024 * 1024  # conservative default = v7x per-TensorCore VMEM
    try:
        info = pltpu.get_tpu_info()
        cap = int(getattr(info, "vmem_capacity_bytes", cap)) or cap
    except Exception:
        pass
    # Leave headroom for compiler-internal scratch; never ask for > ~100 MiB.
    return max(32 * 1024 * 1024, min(int(cap * 0.7), 100 * 1024 * 1024))


def _largest_divisor_multiple(x, q, cap):
    """Largest divisor of x that is a multiple of q and <= cap (None if none)."""
    best = None
    d = q
    top = min(x, cap)
    while d <= top:
        if x % d == 0:
            best = d
        d += q
    return best


def _choose_tiles(N, C, HW, max_elems):
    """Pick (n_blk, c_blk, hw_blk): exact divisors bounding the block size."""
    if HW % 128 == 0:
        hw_cap = max(128, max_elems // max(C, 1))
        hw_blk = _largest_divisor_multiple(HW, 128, hw_cap) or 128
        c_blk = C
        if C * hw_blk > max_elems:
            c_cap = max(8, max_elems // hw_blk)
            c_blk = _largest_divisor_multiple(C, 8, c_cap) or C
    else:
        # HW not lane-aligned (7x7, 14x14, ...): keep full spatial extent on
        # lanes (block == full array dim is always legal) and tile channels
        # instead so the block footprint stays bounded.
        hw_blk = HW
        if C * HW <= max_elems:
            c_blk = C
        else:
            c_cap = max(8, max_elems // HW)
            c_blk = _largest_divisor_multiple(C, 8, c_cap) or C
    n_blk = 1
    if c_blk == C and hw_blk == HW:
        # Whole (C, HW) slab fits: pack several batch elements per block ->
        # one fully contiguous DMA, amortizes ~0.35us/grid-step overhead.
        per_n = max(C * HW, 1)
        cap_n = max(1, max_elems // per_n)
        n_blk = _largest_divisor_multiple(N, 1, cap_n) or 1
    return n_blk, c_blk, hw_blk


# --------------------------------------------------------------------------
# Kernels
# --------------------------------------------------------------------------
def _fused_kernel(x_ref, gamma_ref, beta_ref, o_ref, *, inv_m):
    """Whole tensor VMEM-resident: 1 HBM read + 1 HBM write, centered variance."""
    x = x_ref[...].astype(jnp.float32)                          # (N, C, HW)
    mean = jnp.sum(jnp.sum(x, axis=-1, keepdims=True),
                   axis=0, keepdims=True) * inv_m               # (1, C, 1)
    centered = x - mean
    var = jnp.sum(jnp.sum(centered * centered, axis=-1, keepdims=True),
                  axis=0, keepdims=True) * inv_m
    inv_std = jax.lax.rsqrt(var + EPS)
    g = gamma_ref[...].astype(jnp.float32)[None]                # (1, C, 1)
    b = beta_ref[...].astype(jnp.float32)[None]
    o_ref[...] = (centered * (inv_std * g) + b).astype(o_ref.dtype)


def _stats_kernel(x_ref, psum_ref, psq_ref):
    """Accumulate per-(n-block, channel-block) sum / sum-of-squares over HW tiles."""
    t = pl.program_id(2)

    @pl.when(t == 0)
    def _():
        psum_ref[...] = jnp.zeros_like(psum_ref)
        psq_ref[...] = jnp.zeros_like(psq_ref)

    x = x_ref[...].astype(jnp.float32)                          # (n_blk, c_blk, hw_blk)
    psum_ref[...] += jnp.sum(jnp.sum(x, axis=-1, keepdims=True),
                             axis=0, keepdims=True)
    psq_ref[...] += jnp.sum(jnp.sum(x * x, axis=-1, keepdims=True),
                            axis=0, keepdims=True)


def _norm_kernel(x_ref, scale_ref, shift_ref, o_ref):
    x = x_ref[...].astype(jnp.float32)                          # (n_blk, c_blk, hw_blk)
    s = scale_ref[...][None]                                    # (1, c_blk, 1)
    b = shift_ref[...][None]
    o_ref[...] = (x * s + b).astype(o_ref.dtype)


# --------------------------------------------------------------------------
# Wrapper
# --------------------------------------------------------------------------
def batchnorm2d(x_nchw, gamma, beta, *, max_block_elems=None):
    """x_nchw: (N, C, H, W).  gamma, beta: (C,).  Returns (N, C, H, W)."""
    N, C, H, W = x_nchw.shape
    HW = H * W
    inv_m = 1.0 / float(N * HW)

    vmem_limit = _vmem_budget_bytes()
    if max_block_elems is None:
        # ~8x block footprint live at once (2x in + 2x out double-buffers plus
        # in-kernel f32 temporaries); f32-element accounting.
        max_block_elems = max(128, (vmem_limit // 8) // 4)

    x3d = x_nchw.reshape(N, C, HW)          # zero-cost view, no transpose
    g2d = gamma.reshape(C, 1)
    b2d = beta.reshape(C, 1)

    # ---- fused single-pass path: whole tensor fits in the block budget ----
    if N * C * HW <= max_block_elems:
        y3d = pl.pallas_call(
            functools.partial(_fused_kernel, inv_m=inv_m),
            out_shape=jax.ShapeDtypeStruct((N, C, HW), x_nchw.dtype),
            grid_spec=pltpu.PrefetchScalarGridSpec(
                num_scalar_prefetch=0,
                grid=(1,),
                in_specs=[
                    pl.BlockSpec((N, C, HW), lambda i: (0, 0, 0)),
                    pl.BlockSpec((C, 1), lambda i: (0, 0)),
                    pl.BlockSpec((C, 1), lambda i: (0, 0)),
                ],
                out_specs=pl.BlockSpec((N, C, HW), lambda i: (0, 0, 0)),
            ),
            compiler_params=pltpu.CompilerParams(
                dimension_semantics=("arbitrary",),
                vmem_limit_bytes=vmem_limit),
        )(x3d, g2d, b2d)
        return y3d.reshape(N, C, H, W)

    # ---- streaming two-pass path ------------------------------------------
    n_blk, c_blk, hw_blk = _choose_tiles(N, C, HW, max_block_elems)
    num_n, num_c, num_t = N // n_blk, C // c_blk, HW // hw_blk

    # Pass 1: per-(n-block, channel) partial stats.  No shared accumulator ->
    # batch/channel grid axes are "parallel" (uses both TensorCores on v7x);
    # the HW-tile reduction axis is last / "arbitrary".
    psum, psq = pl.pallas_call(
        _stats_kernel,
        out_shape=(jax.ShapeDtypeStruct((num_n, C, 1), jnp.float32),
                   jax.ShapeDtypeStruct((num_n, C, 1), jnp.float32)),
        grid_spec=pltpu.PrefetchScalarGridSpec(
            num_scalar_prefetch=0,
            grid=(num_n, num_c, num_t),
            in_specs=[
                pl.BlockSpec((n_blk, c_blk, hw_blk), lambda n, c, t: (n, c, t)),
            ],
            out_specs=[
                pl.BlockSpec((1, c_blk, 1), lambda n, c, t: (n, c, 0)),
                pl.BlockSpec((1, c_blk, 1), lambda n, c, t: (n, c, 0)),
            ],
        ),
        compiler_params=pltpu.CompilerParams(
            dimension_semantics=("parallel", "parallel", "arbitrary"),
            vmem_limit_bytes=vmem_limit),
    )(x3d)

    # Tiny C-sized fold in plain JAX (negligible vs. the streamed passes).
    total = jnp.sum(psum, axis=0)                               # (C, 1)
    total_sq = jnp.sum(psq, axis=0)
    mean = total * inv_m
    # Biased variance via E[x^2] - mean^2 in f32; clamp cancellation residue.
    # TODO(synk): use shifted / two-pass variance accumulation for bf16-heavy
    # inputs where |mean| >> std.
    var = jnp.maximum(total_sq * inv_m - mean * mean, 0.0)
    inv_std = jax.lax.rsqrt(var + EPS)
    scale = g2d.astype(jnp.float32) * inv_std                   # (C, 1)
    shift = b2d.astype(jnp.float32) - mean * scale              # (C, 1)

    # Pass 2: y = x * scale + shift, streamed, fully parallel.
    y3d = pl.pallas_call(
        _norm_kernel,
        out_shape=jax.ShapeDtypeStruct((N, C, HW), x_nchw.dtype),
        grid_spec=pltpu.PrefetchScalarGridSpec(
            num_scalar_prefetch=0,
            grid=(num_n, num_c, num_t),
            in_specs=[
                pl.BlockSpec((n_blk, c_blk, hw_blk), lambda n, c, t: (n, c, t)),
                pl.BlockSpec((c_blk, 1), lambda n, c, t: (c, 0)),
                pl.BlockSpec((c_blk, 1), lambda n, c, t: (c, 0)),
            ],
            out_specs=pl.BlockSpec((n_blk, c_blk, hw_blk),
                                   lambda n, c, t: (n, c, t)),
        ),
        compiler_params=pltpu.CompilerParams(
            dimension_semantics=("parallel", "parallel", "parallel"),
            vmem_limit_bytes=vmem_limit),
    )(x3d, scale, shift)

    return y3d.reshape(N, C, H, W)


# --------------------------------------------------------------------------
# Reference + test
# --------------------------------------------------------------------------
def _reference(x_nchw, gamma, beta):
    mean = jnp.mean(x_nchw, axis=(0, 2, 3), keepdims=True)
    var = jnp.mean((x_nchw - mean) ** 2, axis=(0, 2, 3), keepdims=True)
    g = gamma.reshape(1, -1, 1, 1)
    b = beta.reshape(1, -1, 1, 1)
    return (x_nchw - mean) / jnp.sqrt(var + EPS) * g + b


if __name__ == "__main__":
    key = jax.random.PRNGKey(0)
    kx, kg, kb, kx2, kg2, kb2 = jax.random.split(key, 6)

    # Case 1: default dispatch -> fused VMEM-resident single-pass path.
    N, C, H, W = 2, 4, 16, 16
    x = jax.random.normal(kx, (N, C, H, W), dtype=jnp.float32)
    # nn.BatchNorm2d init is weight=1, bias=0; perturb so the affine path is
    # actually exercised.
    gamma = 1.0 + 0.1 * jax.random.normal(kg, (C,), dtype=jnp.float32)
    beta = 0.1 * jax.random.normal(kb, (C,), dtype=jnp.float32)

    out = jax.block_until_ready(batchnorm2d(x, gamma, beta))
    ref = _reference(x, gamma, beta)
    assert out.shape == (N, C, H, W)
    assert jnp.max(jnp.abs(out - ref)) < 1e-4, "fused path mismatch"

    # Case 2: force the streaming two-pass path with lane tiling over HW.
    out2 = jax.block_until_ready(
        batchnorm2d(x, gamma, beta, max_block_elems=512))
    assert jnp.max(jnp.abs(out2 - ref)) < 1e-4, "tiled (HW) path mismatch"

    # Case 3: HW not a multiple of 128 (7x7 maps) -> channel-tiling path.
    N2, C2, H2, W2 = 2, 16, 7, 7
    x2 = jax.random.normal(kx2, (N2, C2, H2, W2), dtype=jnp.float32)
    gamma2 = 1.0 + 0.1 * jax.random.normal(kg2, (C2,), dtype=jnp.float32)
    beta2 = 0.1 * jax.random.normal(kb2, (C2,), dtype=jnp.float32)
    out3 = jax.block_until_ready(
        batchnorm2d(x2, gamma2, beta2, max_block_elems=512))
    ref3 = _reference(x2, gamma2, beta2)
    assert jnp.max(jnp.abs(out3 - ref3)) < 1e-4, "tiled (C) path mismatch"

    print("KERNEL_OK")
</pallas_src>

<mosaic_0001>
module attributes {stable_mosaic.version = 11 : i64} {
  func.func @_fused_kernel(%arg0: i32, %arg1: memref<2x4x256xf32, #tpu.memory_space<vmem>>, %arg2: memref<4x1xf32, #tpu.memory_space<vmem>>, %arg3: memref<4x1xf32, #tpu.memory_space<vmem>>, %arg4: memref<2x4x256xf32, #tpu.memory_space<vmem>>) attributes {dimension_semantics = [#tpu.dimension_semantics<arbitrary>], iteration_bounds = array<i64: 1>, scalar_prefetch = 0 : i64, scratch_operands = 0 : i64, tpu.core_type = #tpu.core_type<tc>, window_params = [{pipeline_mode = #tpu.pipeline_mode<synchronous>, transform_indices = @transform_0, window_bounds = array<i64: 2, 4, 256>}, {pipeline_mode = #tpu.pipeline_mode<synchronous>, transform_indices = @transform_1, window_bounds = array<i64: 4, 1>}, {pipeline_mode = #tpu.pipeline_mode<synchronous>, transform_indices = @transform_2, window_bounds = array<i64: 4, 1>}, {pipeline_mode = #tpu.pipeline_mode<synchronous>, transform_indices = @transform_3, window_bounds = array<i64: 2, 4, 256>}]} {
    %c0 = arith.constant 0 : index
    %c0_0 = arith.constant 0 : index
    %c0_1 = arith.constant 0 : index
    %0 = vector.load %arg1[%c0, %c0_0, %c0_1] : memref<2x4x256xf32, #tpu.memory_space<vmem>>, vector<2x4x256xf32>
    %cst = arith.constant dense<0.000000e+00> : vector<2x4xf32>
    %1 = vector.multi_reduction <add>, %0, %cst [2] : vector<2x4x256xf32> to vector<2x4xf32>
    %2 = vector.shape_cast %1 : vector<2x4xf32> to vector<2x4x1xf32>
    %cst_2 = arith.constant dense<0.000000e+00> : vector<4x1xf32>
    %3 = vector.multi_reduction <add>, %2, %cst_2 [0] : vector<2x4x1xf32> to vector<4x1xf32>
    %4 = vector.shape_cast %3 : vector<4x1xf32> to vector<1x4x1xf32>
    %cst_3 = arith.constant 0.001953125 : f32
    %5 = vector.broadcast %cst_3 : f32 to vector<1x4x1xf32>
    %6 = arith.mulf %4, %5 : vector<1x4x1xf32>
    %7 = vector.broadcast %6 : vector<1x4x1xf32> to vector<2x4x256xf32>
    %8 = arith.subf %0, %7 : vector<2x4x256xf32>
    %9 = arith.mulf %8, %8 : vector<2x4x256xf32>
    %cst_4 = arith.constant dense<0.000000e+00> : vector<2x4xf32>
    %10 = vector.multi_reduction <add>, %9, %cst_4 [2] : vector<2x4x256xf32> to vector<2x4xf32>
    %11 = vector.shape_cast %10 : vector<2x4xf32> to vector<2x4x1xf32>
    %cst_5 = arith.constant dense<0.000000e+00> : vector<4x1xf32>
    %12 = vector.multi_reduction <add>, %11, %cst_5 [0] : vector<2x4x1xf32> to vector<4x1xf32>
    %13 = vector.shape_cast %12 : vector<4x1xf32> to vector<1x4x1xf32>
    %cst_6 = arith.constant 0.001953125 : f32
    %14 = vector.broadcast %cst_6 : f32 to vector<1x4x1xf32>
    %15 = arith.mulf %13, %14 : vector<1x4x1xf32>
    %cst_7 = arith.constant 9.99999974E-6 : f32
    %16 = vector.broadcast %cst_7 : f32 to vector<1x4x1xf32>
    %17 = arith.addf %15, %16 : vector<1x4x1xf32>
    %18 = math.rsqrt %17 : vector<1x4x1xf32>
    %c0_8 = arith.constant 0 : index
    %c0_9 = arith.constant 0 : index
    %19 = vector.load %arg2[%c0_8, %c0_9] : memref<4x1xf32, #tpu.memory_space<vmem>>, vector<4x1xf32>
    %20 = vector.shape_cast %19 : vector<4x1xf32> to vector<1x4x1xf32>
    %c0_10 = arith.constant 0 : index
    %c0_11 = arith.constant 0 : index
    %21 = vector.load %arg3[%c0_10, %c0_11] : memref<4x1xf32, #tpu.memory_space<vmem>>, vector<4x1xf32>
    %22 = vector.shape_cast %21 : vector<4x1xf32> to vector<1x4x1xf32>
    %23 = arith.mulf %18, %20 : vector<1x4x1xf32>
    %24 = vector.broadcast %23 : vector<1x4x1xf32> to vector<2x4x256xf32>
    %25 = arith.mulf %8, %24 : vector<2x4x256xf32>
    %26 = vector.broadcast %22 : vector<1x4x1xf32> to vector<2x4x256xf32>
    %27 = arith.addf %25, %26 : vector<2x4x256xf32>
    %c0_12 = arith.constant 0 : index
    %c0_13 = arith.constant 0 : index
    %c0_14 = arith.constant 0 : index
    %28 = vector.load %arg4[%c0_12, %c0_13, %c0_14] : memref<2x4x256xf32, #tpu.memory_space<vmem>>, vector<2x4x256xf32>
    tpu.vector_store %arg4[%c0_12, %c0_13, %c0_14], %27 {strides = array<i32>} : memref<2x4x256xf32, #tpu.memory_space<vmem>>, vector<2x4x256xf32>,
    return
  }
  func.func @transform_0(%arg0: i32) -> (i32, i32, i32) {
    %c0_i32 = arith.constant 0 : i32
    %c0_i32_0 = arith.constant 0 : i32
    %c0_i32_1 = arith.constant 0 : i32
    %c0_i32_2 = arith.constant 0 : i32
    return %c0_i32, %c0_i32_0, %c0_i32_1 : i32, i32, i32
  }
  func.func @transform_1(%arg0: i32) -> (i32, i32) {
    %c0_i32 = arith.constant 0 : i32
    %c0_i32_0 = arith.constant 0 : i32
    %c0_i32_1 = arith.constant 0 : i32
    return %c0_i32, %c0_i32_0 : i32, i32
  }
  func.func @transform_2(%arg0: i32) -> (i32, i32) {
    %c0_i32 = arith.constant 0 : i32
    %c0_i32_0 = arith.constant 0 : i32
    %c0_i32_1 = arith.constant 0 : i32
    return %c0_i32, %c0_i32_0 : i32, i32
  }
  func.func @transform_3(%arg0: i32) -> (i32, i32, i32) {
    %c0_i32 = arith.constant 0 : i32
    %c0_i32_0 = arith.constant 0 : i32
    %c0_i32_1 = arith.constant 0 : i32
    %c0_i32_2 = arith.constant 0 : i32
    return %c0_i32, %c0_i32_0, %c0_i32_1 : i32, i32, i32
  }
}

</mosaic_0001>

<bundles_post_ra>
// kernel: tpu_custom_call.1
= control target key start
LH: loop header
LB: loop body
LE: loop exit
PB: predicated region body
PF: predicated region fallthrough
CT: control target
= control target key end

     0   :  { %8 = vsyncpa [#allocation3], 0  ;;  %s271_s0 = inlined_call_operand.hbm [shape: f32[2,4,256], index: 0, kind: input, shape index: {}]   ;;  %s272_s1 = inlined_call_operand.vmem [shape: f32[4,1], index: 1, kind: input, shape index: {}]   ;;  %s273_s2 = inlined_call_operand.vmem [shape: f32[4,1], index: 2, kind: input, shape index: {}]   ;;  %s274_s3 = inlined_call_operand.hbm [shape: f32[2,4,256], index: 3, kind: output, shape index: {}]  }
   0x1   :  { %9 = vsyncpa [#allocation4], 0  ;;  %s197_s12 = smov [#allocation2]   ;;  %s149_s16 = scalar_lea.hbm %s271_s0, 256 }
   0x2   :  { %s15_s13 = sshll.u32 %s197_s12, 4  ;;  %p150_p0 = scmp.ne.s32.totalorder %s271_s0, %s149_s16  ;;  %s16_s13 = int_to_ptr.vmem [resolvable:$true] %s15_s13 }
   0x3   :  { %p153_p1 = scmp.lt.u32.totalorder %s149_s16, %s271_s0 }
   0x5   :  { %p155_p2 = pnand %p153_p1, %p150_p0 }
   0x7   :  { %158 = shalt.err (!%p155_p2)
}
   0x8   :  { %s159_s21 = scalar_lea.vmem %s16_s13, 256  ;;  %p164_p4 = scmp.lt.s32.totalorder %s16_s13, %s16_s13 }
   0x9   :  { %p160_p3 = scmp.ne.s32.totalorder %s16_s13, %s159_s21  ;;  %p165_p5 = scmp.lt.s32.totalorder %s159_s21, %s159_s21 }
   0xb   :  { %p166_p6 = por %p165_p5, %p164_p4 }
   0xd   :  { %p167_p7 = pnand %p166_p6, %p160_p3 }
   0xf   :  { %170 = shalt.err (!%p167_p7)
}
  0x10   :  { %s198_s22 = smov 128   ;;  %s199_s23 = smov 8  }
  0x11   :  { %21 = dma.hbm_to_vmem [thread:$0]  %s271_s0, 256, %s16_s13, [#allocation3], %s198_s22, %s198_s22, %s199_s23  }
  0x12   :  { %193 = dma.done.wait [#allocation3], 256  }
  0x13   :  { %194 = vsyncadd [#allocation3], 4294967040  ;;  %vm37_vm0 = vcmask 1043456   ;;  %v29_v0 = vld [vmem:[#allocation2] sm:$0xff]  ;;  %v30_v1 = vld [vmem:[#allocation2 + $0x8] sm:$0xff]  ;;  %v56_v12 = vlaneseq  ;;  %v201_v35 = vmov 0  }
  0x14   :  { %v33_v2 = vcombine.high %v29_v0, %v29_v0  ;;  %v38_v3 = vsel %vm37_vm0, %v29_v0, 0.0  ;;  %v34_v4 = vcombine.high %v30_v1, %v30_v1  ;;  %v43_v6 = vsel %vm37_vm0, %v30_v1, 0.0  ;;  %143 = vset.pattern.permute.xlu0 %v201_v35  ;;  %144 = vset.pattern.permute.xlu1 %v201_v35  ;;  %v88_v36 = vld [vmem:[%s273_s2] sm:$0xf]  ;;  %s202_s2 = smov [#allocation5]  }
  0x15   :  { %v200_v10 = vmov 839922192   ;;  %v57_v15 = vshrl.u32 %v56_v12, 7  ;;  %v87_v44 = vld [vmem:[%s272_s1] sm:$0xf]  ;;  %s125_s29 = sshll.u32 %s202_s2, 4  ;;  %s126_s29 = int_to_ptr.vmem [resolvable:$true] %s125_s29 }
  0x16   :  { %v39_v5 = vsel %vm37_vm0, %v33_v2, 0.0  ;;  %v44_v7 = vsel %vm37_vm0, %v34_v4, 0.0  ;;  %v54_v11 = vunpack.c.l.s4 %v200_v10  ;;  %s171_s30 = scalar_lea.vmem %s126_s29, 256  ;;  %p176_p9 = scmp.lt.s32.totalorder %s126_s29, %s126_s29 }
  0x17   :  { %v40_v8 = vadd.f32 %v39_v5, %v38_v3  ;;  %v45_v9 = vadd.f32 %v44_v7, %v43_v6  ;;  %p172_p8 = scmp.ne.s32.totalorder %s126_s29, %s171_s30  ;;  %p177_p10 = scmp.lt.s32.totalorder %s171_s30, %s171_s30 }
  0x18   :  { %v55_v14 = vunpack.c.0.s8 %v54_v11 }
  0x19   :  { %41 = vadd.xlane.f32.xlu0 %v40_v8  ;;  %p178_p11 = por %p177_p10, %p176_p9 }
  0x1a   :  { %v58_v19 = vsub.s32 %v55_v14, %v57_v15 }
  0x1b   :  { %p179_p12 = pnand %p178_p11, %p172_p8 }
  0x1d   :  { %46 = vadd.xlane.f32.xlu0 %v45_v9 }
  0xa6   :  { %v42_v13 = vpop.xlane.xlu0 %41 }
  0xa7   :  { %v48_v17 = vsel %vm37_vm0, %v42_v13, 0.0 }
  0xaa   :  { %v47_v16 = vpop.xlane.xlu0 %46 }
  0xab   :  { %v49_v18 = vsel %vm37_vm0, %v47_v16, 0.0 }
  0xac   :  { %v50_v20 = vadd.f32 %v49_v18, %v48_v17 }
  0xae   :  { %v51_v21 = vmul.f32 0.001953125, %v50_v20 }
  0xb0   :  { %v59_v22 = vrot.slane %v51_v21, %v58_v19 }
  0xb2   :  { %v62_v23 = vsub.f32 %v30_v1, %v59_v22  ;;  %v61_v24 = vsub.f32 %v29_v0, %v59_v22 }
  0xb4   :  { %v63_v25 = vmul.f32 %v61_v24, %v61_v24  ;;  %v64_v26 = vmul.f32 %v62_v23, %v62_v23 }
  0xb6   :  { %v67_v27 = vcombine.high %v63_v25, %v63_v25  ;;  %v68_v28 = vcombine.high %v64_v26, %v64_v26  ;;  %v71_v29 = vsel %vm37_vm0, %v63_v25, 0.0  ;;  %v76_v33 = vsel %vm37_vm0, %v64_v26, 0.0 }
  0xb8   :  { %v72_v30 = vsel %vm37_vm0, %v67_v27, 0.0  ;;  %v77_v32 = vsel %vm37_vm0, %v68_v28, 0.0 }
  0xb9   :  { %v73_v31 = vadd.f32 %v72_v30, %v71_v29  ;;  %v78_v34 = vadd.f32 %v77_v32, %v76_v33 }
  0xbb   :  { %74 = vadd.xlane.f32.xlu1 %v73_v31 }
  0xbf   :  { %79 = vadd.xlane.f32.xlu1 %v78_v34 }
  0xd0   :  { %106 = vperm.xlu1 %144, %v88_v36  }
 0x148   :  { %v75_v37 = vpop.xlane.xlu1 %74 }
 0x149   :  { %v81_v39 = vsel %vm37_vm0, %v75_v37, 0.0 }
 0x14c   :  { %v80_v38 = vpop.xlane.xlu1 %79 }
 0x14d   :  { %v82_v40 = vsel %vm37_vm0, %v80_v38, 0.0 }
 0x14e   :  { %v83_v41 = vadd.f32 %v82_v40, %v81_v39 }
 0x150   :  { %v84_v42 = vmul.f32 0.001953125, %v83_v41  ;;  %v107_v47 = vpop.permute.xlu1 %106 }
 0x151   :  { %v114_v50 = vrot.slane %v107_v47, %v58_v19 }
 0x152   :  { %v85_v43 = vadd.f32 1e-05, %v84_v42 }
 0x154   :  { %147 = vrsqrt.f32 %v85_v43 }
 0x15e   :  { %v148_v45 = vpop.eup %147 }
 0x15f   :  { %v89_v46 = vmul.f32 %v148_v45, %v87_v44 }
 0x161   :  { %92 = vperm.xlu0 %143, %v89_v46  }
 0x1e0   :  { %v93_v48 = vpop.permute.xlu0 %92 }
 0x1e1   :  { %v100_v49 = vrot.slane %v93_v48, %v58_v19 }
 0x1e3   :  { %v102_v51 = vmul.f32 %v100_v49, %v61_v24  ;;  %v103_v52 = vmul.f32 %v100_v49, %v62_v23 }
 0x1e5   :  { %v116_v53 = vadd.f32 %v114_v50, %v102_v51  ;;  %v117_v54 = vadd.f32 %v114_v50, %v103_v52 }
 0x1e7   :  { %118 = vst [vmem:[#allocation5] sm:$0xff] %v116_v53  ;;  %119 = vst [vmem:[#allocation5 + $0x8] sm:$0xff] %v117_v54 }
 0x1e8   :  { %182 = shalt.err (!%p179_p12)
}
 0x1e9   :  { %s183_s5 = scalar_lea.hbm %s274_s3, 256 }
 0x1ea   :  { %p184_p13 = scmp.ne.s32.totalorder %s274_s3, %s183_s5  ;;  %p187_p0 = scmp.lt.u32.totalorder %s183_s5, %s274_s3 }
 0x1ec   :  { %p189_p1 = pnand %p187_p0, %p184_p13 }
 0x1ee   :  { %192 = shalt.err (!%p189_p1)
}
 0x1ef   :  { %131 = dma.vmem_to_hbm [thread:$0]  %s126_s29, 256, %s274_s3, [#allocation4], %s198_s22, %s198_s22, %s199_s23  }
 0x1f0   :  { %195 = dma.done.wait [#allocation4], 256  }
 0x1f1   :  { %196 = vsyncadd [#allocation4], 4294967040 }
 0x1f2   :  { %135 = vsyncpa [#allocation3], 1 }
 0x1f3   :  { %136 = vsyncpa [#allocation4], 1 }

</bundles_post_ra>
